<compile_context>
chip_gen: v7x
topology: tpu7x:2x2x1
jax: 0.10.0
libtpu: 0.0.40
codegen_flags: <defaults>
</compile_context>

<pallas_src>
import numpy as np
import jax
import jax.numpy as jnp
from jax.experimental import pallas as pl
from jax.experimental.pallas import tpu as pltpu

N_GAUSSIANS = 8
PREFIX = 3
DIM = 69           # 72 - prefix
DP = 128           # lane-padded feature dim
GDP = N_GAUSSIANS * DP


def _pose_prior_kernel(theta_ref, pall_ref, bias_ref, logw_ref, out_ref):
    # theta_ref: (B, DP)      bf16 VMEM   (zero-padded theta[:, prefix:])
    # pall_ref : (DP, G*DP)   bf16 VMEM   (sqrt(0.5)*precs, padded, concatenated)
    # bias_ref : (1, G*DP)    f32  VMEM   (means[g] @ scaled precs[g], concatenated)
    # logw_ref : (1, G)       f32  VMEM
    # out_ref  : (1, 1)       f32  SMEM
    B = theta_ref.shape[0]

    # One big MXU matmul replaces the 8 per-gaussian (B,128)x(128,128) matmuls.
    y = jnp.dot(theta_ref[...], pall_ref[...],
                preferred_element_type=jnp.float32)            # (B, G*DP) f32
    y = y - bias_ref[...]                                      # == (theta - mean_g) @ P_g

    # Per-gaussian squared sums via 128-aligned static lane slices (no relayout).
    sums = []
    for g in range(N_GAUSSIANS):
        yg = y[:, g * DP:(g + 1) * DP]                         # (B, 128)
        sums.append(jnp.sum(yg * yg, axis=-1, keepdims=True))  # (B, 1)
    s = jnp.concatenate(sums, axis=-1)                         # (B, G)

    # Single vector subtract of log-weights, then global min.
    res = s - logw_ref[...]                                    # (B, G)
    out_ref[0, 0] = jnp.min(res)


def prepare_params(means, precs, log_weights):
    """One-time static preprocessing of the mixture parameters.

    Pads 69 -> 128, folds sqrt(0.5) into the precision cholesky factors,
    fuses the 8 gaussians along the output dim, and precomputes the
    mean-projection bias.  Done once at init, NOT per forward call.
    """
    means64 = np.asarray(means, dtype=np.float64)              # (G, 69)
    precs64 = np.asarray(precs, dtype=np.float64)              # (G, 69, 69)
    logw64 = np.asarray(log_weights, dtype=np.float64)         # (G,)

    precs_s = np.sqrt(0.5) * precs64                           # fold the scale in

    pall = np.zeros((DP, GDP), np.float64)
    bias = np.zeros((1, GDP), np.float64)
    for g in range(N_GAUSSIANS):
        pall[:DIM, g * DP:g * DP + DIM] = precs_s[g]
        bias[0, g * DP:g * DP + DIM] = means64[g] @ precs_s[g]

    return (jnp.asarray(pall, dtype=jnp.bfloat16),             # (128, 1024) bf16
            jnp.asarray(bias, dtype=jnp.float32),              # (1, 1024)   f32
            jnp.asarray(logw64.reshape(1, N_GAUSSIANS), dtype=jnp.float32))


def max_mixture_pose_prior(theta, fused_params):
    """theta: (B, 72) f32; fused_params from prepare_params()."""
    pall, bias, logw = fused_params
    B = theta.shape[0]
    theta69 = theta[:, PREFIX:]
    # Only per-call glue: slice, pad to 128 lanes, cast to bf16 for the MXU.
    theta_p = (jnp.zeros((B, DP), jnp.bfloat16)
               .at[:, :DIM].set(theta69.astype(jnp.bfloat16)))

    out = pl.pallas_call(
        _pose_prior_kernel,
        out_shape=jax.ShapeDtypeStruct((1, 1), jnp.float32),
        in_specs=[
            pl.BlockSpec(memory_space=pltpu.MemorySpace.VMEM),   # theta_p
            pl.BlockSpec(memory_space=pltpu.MemorySpace.VMEM),   # P_all
            pl.BlockSpec(memory_space=pltpu.MemorySpace.VMEM),   # bias
            pl.BlockSpec(memory_space=pltpu.MemorySpace.VMEM),   # log-weights
        ],
        out_specs=pl.BlockSpec(memory_space=pltpu.MemorySpace.SMEM),
    )(theta_p, pall, bias, logw)
    return out[0, 0]


def _reference(theta, means, precs, log_weights):
    """Pure numpy float64 ground truth with the original module's math."""
    t = np.asarray(theta, np.float64)[:, PREFIX:]              # (B, 69)
    m = np.asarray(means, np.float64)
    P = np.asarray(precs, np.float64)
    lw = np.asarray(log_weights, np.float64)
    diff = t[:, None, :] - m[None]                             # (B, G, 69)
    ll = np.sqrt(0.5) * np.einsum('bgd,gde->bge', diff, P)
    res = (ll * ll).sum(-1) - lw[None]                         # (B, G)
    return res.min()


def _build_synthetic_gmm(key):
    """Deterministic synthetic GMM with the same shapes/derivation as __init__."""
    # TODO(synk): the original module loads gmm_08.pkl from disk; replaced with an
    # in-script synthetic GMM built with the identical cholesky/weight derivation.
    k_means, k_cov, k_w = jax.random.split(key, 3)
    means = 0.1 * jax.random.normal(k_means, (N_GAUSSIANS, DIM), jnp.float32)

    A = np.asarray(jax.random.normal(k_cov, (N_GAUSSIANS, DIM, DIM)),
                   dtype=np.float64) / np.sqrt(DIM)
    covs = np.einsum('gij,gkj->gik', A, A) + 0.5 * np.eye(DIM)[None]
    precs = np.asarray([np.linalg.cholesky(np.linalg.inv(c)) for c in covs])
    sqrdets = np.array([np.sqrt(np.linalg.det(c)) for c in covs])

    w_raw = np.asarray(jax.random.uniform(k_w, (N_GAUSSIANS,)), dtype=np.float64) + 0.1
    w_raw = w_raw / w_raw.sum()
    const = (2 * np.pi) ** (DIM / 2.0)
    weights = w_raw / (const * (sqrdets / sqrdets.min()))
    log_weights = np.log(weights)

    return np.asarray(means, np.float64), precs, log_weights


if __name__ == "__main__":
    key = jax.random.PRNGKey(0)
    k_gmm, k_theta = jax.random.split(key, 2)

    means, precs, log_weights = _build_synthetic_gmm(k_gmm)

    # One-time parameter fusion (equivalent to module __init__).
    fused_params = prepare_params(means, precs, log_weights)

    batch = 2
    theta = 0.3 * jax.random.normal(k_theta, (batch, PREFIX + DIM), jnp.float32)

    result = max_mixture_pose_prior(theta, fused_params)
    result = jax.block_until_ready(result)

    ref = _reference(np.asarray(theta), means, precs, log_weights)
    np.testing.assert_allclose(np.asarray(result), ref, rtol=1e-2, atol=1e-2)

    print("KERNEL_OK")
</pallas_src>

<mosaic_0001>
module attributes {stable_mosaic.version = 11 : i64} {
  func.func @_pose_prior_kernel(%arg0: memref<2x128xbf16, #tpu.memory_space<vmem>>, %arg1: memref<128x1024xbf16, #tpu.memory_space<vmem>>, %arg2: memref<1x1024xf32, #tpu.memory_space<vmem>>, %arg3: memref<1x8xf32, #tpu.memory_space<vmem>>, %arg4: memref<1x1xf32, #tpu.memory_space<smem>>) attributes {dimension_semantics = [], scalar_prefetch = 0 : i64, scratch_operands = 0 : i64, tpu.core_type = #tpu.core_type<tc>} {
    %c0 = arith.constant 0 : index
    %c0_0 = arith.constant 0 : index
    %0 = vector.load %arg0[%c0, %c0_0] : memref<2x128xbf16, #tpu.memory_space<vmem>>, vector<2x128xbf16>
    %c0_1 = arith.constant 0 : index
    %c0_2 = arith.constant 0 : index
    %1 = vector.load %arg1[%c0_1, %c0_2] : memref<128x1024xbf16, #tpu.memory_space<vmem>>, vector<128x1024xbf16>
    %cst = arith.constant dense<0.000000e+00> : vector<2x1024xf32>
    %2 = tpu.matmul %0, %1, %cst {dimension_numbers = #tpu.dot_dimension_numbers<[1], [0], [0], [1], [0, 0, 1, 1], [], []>} : vector<2x128xbf16>, vector<128x1024xbf16>, vector<2x1024xf32> -> vector<2x1024xf32>
    %c0_3 = arith.constant 0 : index
    %c0_4 = arith.constant 0 : index
    %3 = vector.load %arg2[%c0_3, %c0_4] : memref<1x1024xf32, #tpu.memory_space<vmem>>, vector<1x1024xf32>
    %4 = vector.broadcast %3 : vector<1x1024xf32> to vector<2x1024xf32>
    %5 = arith.subf %2, %4 : vector<2x1024xf32>
    %6 = vector.extract_strided_slice %5 {offsets = [0, 0], sizes = [2, 128], strides = [1, 1]} : vector<2x1024xf32> to vector<2x128xf32>
    %7 = arith.mulf %6, %6 : vector<2x128xf32>
    %cst_5 = arith.constant dense<0.000000e+00> : vector<2xf32>
    %8 = vector.multi_reduction <add>, %7, %cst_5 [1] : vector<2x128xf32> to vector<2xf32>
    %9 = vector.shape_cast %8 : vector<2xf32> to vector<2x1xf32>
    %10 = vector.extract_strided_slice %5 {offsets = [0, 128], sizes = [2, 128], strides = [1, 1]} : vector<2x1024xf32> to vector<2x128xf32>
    %11 = arith.mulf %10, %10 : vector<2x128xf32>
    %cst_6 = arith.constant dense<0.000000e+00> : vector<2xf32>
    %12 = vector.multi_reduction <add>, %11, %cst_6 [1] : vector<2x128xf32> to vector<2xf32>
    %13 = vector.shape_cast %12 : vector<2xf32> to vector<2x1xf32>
    %14 = vector.extract_strided_slice %5 {offsets = [0, 256], sizes = [2, 128], strides = [1, 1]} : vector<2x1024xf32> to vector<2x128xf32>
    %15 = arith.mulf %14, %14 : vector<2x128xf32>
    %cst_7 = arith.constant dense<0.000000e+00> : vector<2xf32>
    %16 = vector.multi_reduction <add>, %15, %cst_7 [1] : vector<2x128xf32> to vector<2xf32>
    %17 = vector.shape_cast %16 : vector<2xf32> to vector<2x1xf32>
    %18 = vector.extract_strided_slice %5 {offsets = [0, 384], sizes = [2, 128], strides = [1, 1]} : vector<2x1024xf32> to vector<2x128xf32>
    %19 = arith.mulf %18, %18 : vector<2x128xf32>
    %cst_8 = arith.constant dense<0.000000e+00> : vector<2xf32>
    %20 = vector.multi_reduction <add>, %19, %cst_8 [1] : vector<2x128xf32> to vector<2xf32>
    %21 = vector.shape_cast %20 : vector<2xf32> to vector<2x1xf32>
    %22 = vector.extract_strided_slice %5 {offsets = [0, 512], sizes = [2, 128], strides = [1, 1]} : vector<2x1024xf32> to vector<2x128xf32>
    %23 = arith.mulf %22, %22 : vector<2x128xf32>
    %cst_9 = arith.constant dense<0.000000e+00> : vector<2xf32>
    %24 = vector.multi_reduction <add>, %23, %cst_9 [1] : vector<2x128xf32> to vector<2xf32>
    %25 = vector.shape_cast %24 : vector<2xf32> to vector<2x1xf32>
    %26 = vector.extract_strided_slice %5 {offsets = [0, 640], sizes = [2, 128], strides = [1, 1]} : vector<2x1024xf32> to vector<2x128xf32>
    %27 = arith.mulf %26, %26 : vector<2x128xf32>
    %cst_10 = arith.constant dense<0.000000e+00> : vector<2xf32>
    %28 = vector.multi_reduction <add>, %27, %cst_10 [1] : vector<2x128xf32> to vector<2xf32>
    %29 = vector.shape_cast %28 : vector<2xf32> to vector<2x1xf32>
    %30 = vector.extract_strided_slice %5 {offsets = [0, 768], sizes = [2, 128], strides = [1, 1]} : vector<2x1024xf32> to vector<2x128xf32>
    %31 = arith.mulf %30, %30 : vector<2x128xf32>
    %cst_11 = arith.constant dense<0.000000e+00> : vector<2xf32>
    %32 = vector.multi_reduction <add>, %31, %cst_11 [1] : vector<2x128xf32> to vector<2xf32>
    %33 = vector.shape_cast %32 : vector<2xf32> to vector<2x1xf32>
    %34 = vector.extract_strided_slice %5 {offsets = [0, 896], sizes = [2, 128], strides = [1, 1]} : vector<2x1024xf32> to vector<2x128xf32>
    %35 = arith.mulf %34, %34 : vector<2x128xf32>
    %cst_12 = arith.constant dense<0.000000e+00> : vector<2xf32>
    %36 = vector.multi_reduction <add>, %35, %cst_12 [1] : vector<2x128xf32> to vector<2xf32>
    %37 = vector.shape_cast %36 : vector<2xf32> to vector<2x1xf32>
    %38 = tpu.concatenate %9, %13, %17, %21, %25, %29, %33, %37 in 1 : vector<2x1xf32>, vector<2x1xf32>, vector<2x1xf32>, vector<2x1xf32>, vector<2x1xf32>, vector<2x1xf32>, vector<2x1xf32>, vector<2x1xf32> -> vector<2x8xf32>
    %c0_13 = arith.constant 0 : index
    %c0_14 = arith.constant 0 : index
    %39 = vector.load %arg3[%c0_13, %c0_14] : memref<1x8xf32, #tpu.memory_space<vmem>>, vector<1x8xf32>
    %40 = vector.broadcast %39 : vector<1x8xf32> to vector<2x8xf32>
    %41 = arith.subf %38, %40 : vector<2x8xf32>
    %42 = vector.shape_cast %41 : vector<2x8xf32> to vector<1x2x8xf32>
    %cst_15 = arith.constant dense<0x7F800000> : vector<1xf32>
    %43 = vector.multi_reduction <minimumf>, %42, %cst_15 [1, 2] : vector<1x2x8xf32> to vector<1xf32>
    %44 = vector.shape_cast %43 : vector<1xf32> to vector<1x1x1xf32>
    %45 = vector.extract %44[0, 0, 0] : f32 from vector<1x1x1xf32>
    %c0_16 = arith.constant 0 : index
    %c0_17 = arith.constant 0 : index
    %46 = memref.load %arg4[%c0_16, %c0_17] : memref<1x1xf32, #tpu.memory_space<smem>>
    memref.store %45, %arg4[%c0_16, %c0_17] : memref<1x1xf32, #tpu.memory_space<smem>>
    return
  }
}

</mosaic_0001>

<bundles_post_ra>
// kernel: tpu_custom_call.1
= control target key start
LH: loop header
LB: loop body
LE: loop exit
PB: predicated region body
PF: predicated region fallthrough
CT: control target
= control target key end

     0   :  { %9 = vsyncpa [#allocation3], 0  ;;  %s995_s0 = inlined_call_operand.hbm [shape: bf16[2,128], index: 0, kind: input, shape index: {}]   ;;  %s996_s1 = inlined_call_operand.hbm [shape: bf16[128,1024], index: 1, kind: input, shape index: {}]   ;;  %s997_s2 = inlined_call_operand.hbm [shape: f32[1,1024], index: 2, kind: input, shape index: {}]   ;;  %s998_s3 = inlined_call_operand.vmem [shape: f32[1,8], index: 3, kind: input, shape index: {}]   ;;  %s999_s4 = inlined_call_operand.hbm [shape: f32[1,1], index: 4, kind: output, shape index: {}]  }
   0x1   :  { %10 = vsyncpa [#allocation6], 0 }
   0x2   :  { %11 = vsyncpa [#allocation4], 0  ;;  %s894_s15 = smov [#allocation5]   ;;  %s812_s19 = scalar_lea.hbm %s996_s1, 8192 }
   0x3   :  { %s27_s16 = sshll.u32 %s894_s15, 4  ;;  %p813_p0 = scmp.ne.s32.totalorder %s996_s1, %s812_s19  ;;  %s28_s16 = int_to_ptr.vmem [resolvable:$true] %s27_s16 }
   0x4   :  { %p816_p1 = scmp.lt.u32.totalorder %s812_s19, %s996_s1 }
   0x6   :  { %p818_p2 = pnand %p816_p1, %p813_p0 }
   0x8   :  { %821 = shalt.err (!%p818_p2)
}
   0x9   :  { %s822_s24 = scalar_lea.vmem %s28_s16, 8192  ;;  %p827_p4 = scmp.lt.s32.totalorder %s28_s16, %s28_s16 }
   0xa   :  { %p823_p3 = scmp.ne.s32.totalorder %s28_s16, %s822_s24  ;;  %p828_p5 = scmp.lt.s32.totalorder %s822_s24, %s822_s24 }
   0xc   :  { %p829_p6 = por %p828_p5, %p827_p4 }
   0xe   :  { %p830_p7 = pnand %p829_p6, %p823_p3 }
  0x10   :  { %833 = shalt.err (!%p830_p7)
}
  0x11   :  { %s895_s25 = smov 512   ;;  %s896_s26 = smov 32  }
  0x12   :  { %33 = dma.hbm_to_vmem [thread:$0]  %s996_s1, 8192, %s28_s16, [#allocation6], %s895_s25, %s895_s25, %s896_s26  }
  0x13   :  { %s897_s29 = smov [#allocation2]   ;;  %s898_s5 = smov [#allocation7]  }
  0x14   :  { %s18_s30 = sshll.u32 %s897_s29, 4  ;;  %s40_s6 = sshll.u32 %s898_s5, 4  ;;  %s19_s30 = int_to_ptr.vmem [resolvable:$true] %s18_s30  ;;  %s41_s6 = int_to_ptr.vmem [resolvable:$true] %s40_s6 }
  0x15   :  { %s834_s9 = scalar_lea.hbm %s995_s0, 16 }
  0x16   :  { %p835_p8 = scmp.ne.s32.totalorder %s995_s0, %s834_s9  ;;  %p838_p9 = scmp.lt.u32.totalorder %s834_s9, %s995_s0 }
  0x18   :  { %p840_p10 = pnand %p838_p9, %p835_p8 }
  0x1a   :  { %843 = shalt.err (!%p840_p10)
}
  0x1b   :  { %s844_s1 = scalar_lea.vmem %s19_s30, 16  ;;  %s848_s14 = scalar_lea.vmem %s19_s30, 32 }
  0x1c   :  { %p845_p11 = scmp.ne.s32.totalorder %s19_s30, %s844_s1  ;;  %p849_p12 = scmp.lt.s32.totalorder %s19_s30, %s19_s30 }
  0x1d   :  { %p850_p13 = scmp.lt.s32.totalorder %s848_s14, %s844_s1 }
  0x1f   :  { %p851_p0 = por %p850_p13, %p849_p12 }
  0x21   :  { %p852_p1 = pnand %p851_p0, %p845_p11 }
  0x23   :  { %855 = shalt.err (!%p852_p1)
}
  0x24   :  { %21 = dma.hbm_to_vmem [thread:$0]  %s995_s0, 16, %s19_s30, [#allocation3]  }
  0x25   :  { %s856_s19 = scalar_lea.hbm %s997_s2, 128 }
  0x26   :  { %p857_p2 = scmp.ne.s32.totalorder %s997_s2, %s856_s19  ;;  %p860_p3 = scmp.lt.u32.totalorder %s856_s19, %s997_s2 }
  0x28   :  { %p862_p4 = pnand %p860_p3, %p857_p2 }
  0x2a   :  { %865 = shalt.err (!%p862_p4)
}
  0x2b   :  { %s866_s24 = scalar_lea.vmem %s41_s6, 128  ;;  %p871_p6 = scmp.lt.s32.totalorder %s41_s6, %s41_s6 }
  0x2c   :  { %p867_p5 = scmp.ne.s32.totalorder %s41_s6, %s866_s24  ;;  %p872_p7 = scmp.lt.s32.totalorder %s866_s24, %s866_s24 }
  0x2e   :  { %p873_p8 = por %p872_p7, %p871_p6 }
  0x30   :  { %p874_p9 = pnand %p873_p8, %p867_p5 }
  0x32   :  { %877 = shalt.err (!%p874_p9)
}
  0x33   :  { %43 = dma.hbm_to_vmem [thread:$0]  %s997_s2, 128, %s41_s6, [#allocation6]  }
  0x34   :  { %888 = dma.done.wait [#allocation3], 16  }
  0x35   :  { %889 = vsyncadd [#allocation3], 4294967280 }
  0x36   :  { %890 = dma.done.wait [#allocation6], 8320  }
  0x37   :  { %891 = vsyncadd [#allocation6], 4294958976  ;;  %v899_v0 = vmov 0   ;;  %v57_v1 = vld [vmem:[#allocation5] sm:$0xff]  ;;  %v58_v3 = vld [vmem:[#allocation5 + $0x8] sm:$0xff]  ;;  %vm656_vm0 = vcmask 1041408  }
  0x38   :  { %473 = vmatprep.mubr.bf16.mxu0 %v899_v0  ;;  %514 = vmatprep.mubr.bf16.mxu1 %v899_v0  ;;  %v61_v2 = vld [vmem:[#allocation5 + $0x20] sm:$0xff]  ;;  %v62_v6 = vld [vmem:[#allocation5 + $0x28] sm:$0xff]  ;;  %v59_v63 = vld [vmem:[#allocation5 + $0x10] sm:$0xff]  ;;  %vm688_vm1 = vcmask 7168   ;;  %vm690_vm2 = vcmask 15360   ;;  %vm692_vm3 = vcmask 23552  }
  0x39   :  { %v739_v4 = vcombine.high %v57_v1, %v61_v2  ;;  %v738_v5 = vcombine.low %v57_v1, %v61_v2  ;;  %v65_v7 = vld [vmem:[#allocation5 + $0x40] sm:$0xff]  ;;  %v741_v9 = vcombine.high %v58_v3, %v62_v6  ;;  %v740_v10 = vcombine.low %v58_v3, %v62_v6  ;;  %v66_v12 = vld [vmem:[#allocation5 + $0x48] sm:$0xff]  ;;  %v63_v1 = vld [vmem:[#allocation5 + $0x30] sm:$0xff] }
  0x3a   :  { %v69_v8 = vld [vmem:[#allocation5 + $0x60] sm:$0xff]  ;;  %v70_v13 = vld [vmem:[#allocation5 + $0x68] sm:$0xff]  ;;  %v60_v2 = vld [vmem:[#allocation5 + $0x18] sm:$0xff]  ;;  %v743_v6 = vcombine.high %v59_v63, %v63_v1  ;;  %vm694_vm4 = vcmask 31744   ;;  %vm696_vm5 = vcmask 39936   ;;  %vm698_vm6 = vcmask 48128  }
  0x3b   :  { %v747_v11 = vcombine.high %v65_v7, %v69_v8  ;;  %v73_v14 = vld [vmem:[#allocation5 + $0x80] sm:$0xff]  ;;  %441 = vmatprep.subr.bf16.mxu0 %v739_v4  ;;  %v749_v15 = vcombine.high %v66_v12, %v70_v13  ;;  %v74_v17 = vld [vmem:[#allocation5 + $0x88] sm:$0xff]  ;;  %482 = vmatprep.subr.bf16.mxu1 %v741_v9  ;;  %v746_v19 = vcombine.low %v65_v7, %v69_v8  ;;  %v64_v3 = vld [vmem:[#allocation5 + $0x38] sm:$0xff]  ;;  %vm700_vm7 = vcmask 56320  }
  0x3c   :  { %v77_v16 = vld [vmem:[#allocation5 + $0xa0] sm:$0xff]  ;;  %v78_v18 = vld [vmem:[#allocation5 + $0xa8] sm:$0xff]  ;;  %442 = vmatpush1.bf16.msra.mxu0 %v738_v5  ;;  %483 = vmatpush1.bf16.msra.mxu1 %v740_v10  ;;  %v748_v20 = vcombine.low %v66_v12, %v70_v13  ;;  %v745_v7 = vcombine.high %v60_v2, %v64_v3  ;;  %v67_v8 = vld [vmem:[#allocation5 + $0x50] sm:$0xff]  ;;  %v742_v13 = vcombine.low %v59_v63, %v63_v1  ;;  %vm710_vm8 = vcmask 58368  }
  0x3d   :  { %443 = vmatprep.subr.bf16.mxu0 %v747_v11  ;;  %v755_v21 = vcombine.high %v73_v14, %v77_v16  ;;  %484 = vmatprep.subr.bf16.mxu1 %v749_v15  ;;  %v757_v22 = vcombine.high %v74_v17, %v78_v18  ;;  %v81_v23 = vld [vmem:[#allocation5 + $0xc0] sm:$0xff]  ;;  %v82_v25 = vld [vmem:[#allocation5 + $0xc8] sm:$0xff]  ;;  %v754_v27 = vcombine.low %v73_v14, %v77_v16  ;;  %v71_v9 = vld [vmem:[#allocation5 + $0x70] sm:$0xff] }
  0x3e   :  { %v85_v24 = vld [vmem:[#allocation5 + $0xe0] sm:$0xff]  ;;  %v86_v26 = vld [vmem:[#allocation5 + $0xe8] sm:$0xff]  ;;  %v756_v28 = vcombine.low %v74_v17, %v78_v18  ;;  %v68_v10 = vld [vmem:[#allocation5 + $0x58] sm:$0xff]  ;;  %v744_v14 = vcombine.low %v60_v2, %v64_v3  ;;  %v751_v15 = vcombine.high %v67_v8, %v71_v9  ;;  %v607_v3 = vlaneseq }
  0x3f   :  { %v763_v29 = vcombine.high %v81_v23, %v85_v24  ;;  %v765_v30 = vcombine.high %v82_v25, %v86_v26  ;;  %v89_v31 = vld [vmem:[#allocation5 + $0x100] sm:$0xff]  ;;  %v90_v33 = vld [vmem:[#allocation5 + $0x108] sm:$0xff]  ;;  %v762_v35 = vcombine.low %v81_v23, %v85_v24  ;;  %v764_v36 = vcombine.low %v82_v25, %v86_v26  ;;  %v72_v11 = vld [vmem:[#allocation5 + $0x78] sm:$0xff] }
  0x40   :  { %444 = vmatpush1.bf16.msra.mxu0 %v746_v19  ;;  %485 = vmatpush1.bf16.msra.mxu1 %v748_v20  ;;  %v93_v32 = vld [vmem:[#allocation5 + $0x120] sm:$0xff]  ;;  %v94_v34 = vld [vmem:[#allocation5 + $0x128] sm:$0xff]  ;;  %v964_v12 = vld [vmem:[#allocation2] sm:$0x1]  ;;  %v753_v16 = vcombine.high %v68_v10, %v72_v11 }
  0x41   :  { %445 = vmatprep.subr.bf16.mxu0 %v755_v21  ;;  %486 = vmatprep.subr.bf16.mxu1 %v757_v22  ;;  %v771_v37 = vcombine.high %v89_v31, %v93_v32  ;;  %v773_v38 = vcombine.high %v90_v33, %v94_v34  ;;  %v97_v39 = vld [vmem:[#allocation5 + $0x140] sm:$0xff]  ;;  %v98_v41 = vld [vmem:[#allocation5 + $0x148] sm:$0xff]  ;;  %v770_v43 = vcombine.low %v89_v31, %v93_v32  ;;  %v75_v17 = vld [vmem:[#allocation5 + $0x90] sm:$0xff] }
  0x42   :  { %v101_v40 = vld [vmem:[#allocation5 + $0x160] sm:$0xff]  ;;  %v102_v42 = vld [vmem:[#allocation5 + $0x168] sm:$0xff]  ;;  %v772_v44 = vcombine.low %v90_v33, %v94_v34  ;;  %v79_v18 = vld [vmem:[#allocation5 + $0xb0] sm:$0xff]  ;;  %v750_v21 = vcombine.low %v67_v8, %v71_v9  ;;  %v752_v22 = vcombine.low %v68_v10, %v72_v11 }
  0x43   :  { %v779_v45 = vcombine.high %v97_v39, %v101_v40  ;;  %v781_v46 = vcombine.high %v98_v41, %v102_v42  ;;  %v105_v47 = vld [vmem:[#allocation5 + $0x180] sm:$0xff]  ;;  %v106_v49 = vld [vmem:[#allocation5 + $0x188] sm:$0xff]  ;;  %v778_v51 = vcombine.low %v97_v39, %v101_v40  ;;  %v780_v52 = vcombine.low %v98_v41, %v102_v42  ;;  %v76_v19 = vld [vmem:[#allocation5 + $0x98] sm:$0xff] }
  0x44   :  { %446 = vmatpush1.bf16.msra.mxu0 %v754_v27  ;;  %487 = vmatpush1.bf16.msra.mxu1 %v756_v28  ;;  %v109_v48 = vld [vmem:[#allocation5 + $0x1a0] sm:$0xff]  ;;  %v110_v50 = vld [vmem:[#allocation5 + $0x1a8] sm:$0xff]  ;;  %v80_v20 = vld [vmem:[#allocation5 + $0xb8] sm:$0xff]  ;;  %v759_v23 = vcombine.high %v75_v17, %v79_v18 }
  0x45   :  { %447 = vmatprep.subr.bf16.mxu0 %v763_v29  ;;  %488 = vmatprep.subr.bf16.mxu1 %v765_v30  ;;  %v787_v53 = vcombine.high %v105_v47, %v109_v48  ;;  %v789_v54 = vcombine.high %v106_v49, %v110_v50  ;;  %v113_v55 = vld [vmem:[#allocation5 + $0x1c0] sm:$0xff]  ;;  %v114_v57 = vld [vmem:[#allocation5 + $0x1c8] sm:$0xff]  ;;  %v786_v59 = vcombine.low %v105_v47, %v109_v48  ;;  %v83_v25 = vld [vmem:[#allocation5 + $0xd0] sm:$0xff] }
  0x46   :  { %v117_v56 = vld [vmem:[#allocation5 + $0x1e0] sm:$0xff]  ;;  %v118_v58 = vld [vmem:[#allocation5 + $0x1e8] sm:$0xff]  ;;  %v788_v60 = vcombine.low %v106_v49, %v110_v50  ;;  %v761_v24 = vcombine.high %v76_v19, %v80_v20  ;;  %v87_v26 = vld [vmem:[#allocation5 + $0xf0] sm:$0xff]  ;;  %v758_v29 = vcombine.low %v75_v17, %v79_v18  ;;  %v760_v30 = vcombine.low %v76_v19, %v80_v20 }
  0x47   :  { %v795_v61 = vcombine.high %v113_v55, %v117_v56  ;;  %v797_v62 = vcombine.high %v114_v57, %v118_v58  ;;  %v794_v4 = vcombine.low %v113_v55, %v117_v56  ;;  %v796_v5 = vcombine.low %v114_v57, %v118_v58  ;;  %v84_v27 = vld [vmem:[#allocation5 + $0xd8] sm:$0xff]  ;;  %v91_v33 = vld [vmem:[#allocation5 + $0x110] sm:$0xff] }
  0x48   :  { %448 = vmatpush1.bf16.msra.mxu0 %v762_v35  ;;  %489 = vmatpush1.bf16.msra.mxu1 %v764_v36  ;;  %v88_v28 = vld [vmem:[#allocation5 + $0xf8] sm:$0xff]  ;;  %v767_v31 = vcombine.high %v83_v25, %v87_v26  ;;  %v95_v34 = vld [vmem:[#allocation5 + $0x130] sm:$0xff] }
  0x49   :  { %449 = vmatprep.subr.bf16.mxu0 %v771_v37  ;;  %490 = vmatprep.subr.bf16.mxu1 %v773_v38  ;;  %v769_v32 = vcombine.high %v84_v27, %v88_v28  ;;  %v92_v35 = vld [vmem:[#allocation5 + $0x118] sm:$0xff]  ;;  %v766_v37 = vcombine.low %v83_v25, %v87_v26  ;;  %v768_v38 = vcombine.low %v84_v27, %v88_v28  ;;  %v99_v40 = vld [vmem:[#allocation5 + $0x150] sm:$0xff] }
  0x4a   :  { %v96_v36 = vld [vmem:[#allocation5 + $0x138] sm:$0xff]  ;;  %v775_v39 = vcombine.high %v91_v33, %v95_v34  ;;  %v103_v41 = vld [vmem:[#allocation5 + $0x170] sm:$0xff] }
  0x4b   :  { %v100_v42 = vld [vmem:[#allocation5 + $0x158] sm:$0xff]  ;;  %v107_v48 = vld [vmem:[#allocation5 + $0x190] sm:$0xff] }
  0x4c   :  { %450 = vmatpush1.bf16.msra.mxu0 %v770_v43  ;;  %491 = vmatpush1.bf16.msra.mxu1 %v772_v44  ;;  %v104_v43 = vld [vmem:[#allocation5 + $0x178] sm:$0xff]  ;;  %v774_v44 = vcombine.low %v91_v33, %v95_v34  ;;  %v111_v49 = vld [vmem:[#allocation5 + $0x1b0] sm:$0xff] }
  0x4d   :  { %451 = vmatprep.subr.bf16.mxu0 %v779_v45  ;;  %492 = vmatprep.subr.bf16.mxu1 %v781_v46  ;;  %v776_v45 = vcombine.low %v92_v35, %v96_v36  ;;  %v783_v46 = vcombine.high %v99_v40, %v103_v41  ;;  %v785_v47 = vcombine.high %v100_v42, %v104_v43  ;;  %v108_v50 = vld [vmem:[#allocation5 + $0x198] sm:$0xff]  ;;  %v115_v56 = vld [vmem:[#allocation5 + $0x1d0] sm:$0xff] }
  0x4e   :  { %v119_v57 = vld [vmem:[#allocation5 + $0x1f0] sm:$0xff]  ;;  %v116_v58 = vld [vmem:[#allocation5 + $0x1d8] sm:$0xff] }
  0x4f   :  { %v798_v1 = vcombine.low %v115_v56, %v119_v57 }
  0x50   :  { %452 = vmatpush1.bf16.msra.mxu0 %v778_v51  ;;  %493 = vmatpush1.bf16.msra.mxu1 %v780_v52  ;;  %v112_v51 = vld [vmem:[#allocation5 + $0x1b8] sm:$0xff]  ;;  %v782_v52 = vcombine.low %v99_v40, %v103_v41 }
  0x51   :  { %453 = vmatprep.subr.bf16.mxu0 %v787_v53  ;;  %494 = vmatprep.subr.bf16.mxu1 %v789_v54  ;;  %v784_v53 = vcombine.low %v100_v42, %v104_v43  ;;  %v791_v54 = vcombine.high %v107_v48, %v111_v49  ;;  %v793_v55 = vcombine.high %v108_v50, %v112_v51 }
  0x54   :  { %454 = vmatpush1.bf16.msra.mxu0 %v786_v59  ;;  %495 = vmatpush1.bf16.msra.mxu1 %v788_v60  ;;  %v120_v59 = vld [vmem:[#allocation5 + $0x1f8] sm:$0xff]  ;;  %v790_v60 = vcombine.low %v107_v48, %v111_v49 }
  0x55   :  { %455 = vmatprep.subr.bf16.mxu0 %v795_v61  ;;  %496 = vmatprep.subr.bf16.mxu1 %v797_v62  ;;  %v792_v61 = vcombine.low %v108_v50, %v112_v51  ;;  %v799_v62 = vcombine.high %v115_v56, %v119_v57  ;;  %v801_v63 = vcombine.high %v116_v58, %v120_v59 }
  0x56   :  { %v800_v2 = vcombine.low %v116_v58, %v120_v59 }
  0x58   :  { %456 = vmatpush1.bf16.msra.mxu0 %v794_v4  ;;  %497 = vmatpush1.bf16.msra.mxu1 %v796_v5  ;;  %v608_v4 = vshrl.u32 %v607_v3, 7 }
  0x59   :  { %523 = vmatprep.subr.bf16.mxu0 %v743_v6  ;;  %564 = vmatprep.subr.bf16.mxu1 %v745_v7  ;;  %v605_v6 = vld [vmem:[#allocation7] sm:$0xff] }
  0x5a   :  { %v609_v5 = vsub.s32 0, %v608_v4  ;;  %v613_v7 = vsub.s32 1, %v608_v4  ;;  %v617_v8 = vsub.s32 2, %v608_v4  ;;  %v621_v9 = vsub.s32 3, %v608_v4 }
  0x5b   :  { %474 = vmatmul.mubr.bf16.vlgmr.msra.gmra.mrb[0].mxu0 %v964_v12  ;;  %515 = vmatmul.mubr.bf16.vlgmr.msra.gmra.mrb[0].mxu1 %v964_v12  ;;  %v625_v34 = vsub.s32 4, %v608_v4 }
  0x5c   :  { %524 = vmatpush1.bf16.msra.mxu0 %v742_v13  ;;  %565 = vmatpush1.bf16.msra.mxu1 %v744_v14  ;;  %v610_v10 = vrot.slane %v605_v6, %v609_v5  ;;  %v614_v11 = vrot.slane %v605_v6, %v613_v7  ;;  %v618_v13 = vrot.slane %v605_v6, %v617_v8 }
  0x5d   :  { %525 = vmatprep.subr.bf16.mxu0 %v751_v15  ;;  %566 = vmatprep.subr.bf16.mxu1 %v753_v16  ;;  %v622_v14 = vrot.slane %v605_v6, %v621_v9 }
  0x5e   :  { %555 = vmatprep.mubr.bf16.mxu0 %v899_v0  ;;  %596 = vmatprep.mubr.bf16.mxu1 %v899_v0  ;;  %v777_v0 = vcombine.high %v92_v35, %v96_v36  ;;  %v629_v35 = vsub.s32 5, %v608_v4  ;;  %v633_v36 = vsub.s32 6, %v608_v4 }
  0x60   :  { %526 = vmatpush1.bf16.msra.mxu0 %v750_v21  ;;  %567 = vmatpush1.bf16.msra.mxu1 %v752_v22 }
  0x61   :  { %527 = vmatprep.subr.bf16.mxu0 %v759_v23  ;;  %568 = vmatprep.subr.bf16.mxu1 %v761_v24 }
  0x64   :  { %528 = vmatpush1.bf16.msra.mxu0 %v758_v29  ;;  %569 = vmatpush1.bf16.msra.mxu1 %v760_v30 }
  0x65   :  { %529 = vmatprep.subr.bf16.mxu0 %v767_v31  ;;  %570 = vmatprep.subr.bf16.mxu1 %v769_v32 }
  0x68   :  { %530 = vmatpush1.bf16.msra.mxu0 %v766_v37  ;;  %571 = vmatpush1.bf16.msra.mxu1 %v768_v38  ;;  %v637_v37 = vsub.s32 7, %v608_v4  ;;  %v626_v38 = vrot.slane %v605_v6, %v625_v34 }
  0x69   :  { %531 = vmatprep.subr.bf16.mxu0 %v775_v39  ;;  %572 = vmatprep.subr.bf16.mxu1 %v777_v0  ;;  %v630_v39 = vrot.slane %v605_v6, %v629_v35  ;;  %v634_v0 = vrot.slane %v605_v6, %v633_v36 }
  0x6a   :  { %v638_v40 = vrot.slane %v605_v6, %v637_v37 }
  0x6c   :  { %532 = vmatpush1.bf16.msra.mxu0 %v774_v44  ;;  %573 = vmatpush1.bf16.msra.mxu1 %v776_v45 }
  0x6d   :  { %533 = vmatprep.subr.bf16.mxu0 %v783_v46  ;;  %574 = vmatprep.subr.bf16.mxu1 %v785_v47 }
  0x70   :  { %534 = vmatpush1.bf16.msra.mxu0 %v782_v52  ;;  %575 = vmatpush1.bf16.msra.mxu1 %v784_v53 }
  0x71   :  { %535 = vmatprep.subr.bf16.mxu0 %v791_v54  ;;  %576 = vmatprep.subr.bf16.mxu1 %v793_v55 }
  0x74   :  { %536 = vmatpush1.bf16.msra.mxu0 %v790_v60  ;;  %577 = vmatpush1.bf16.msra.mxu1 %v792_v61 }
  0x75   :  { %537 = vmatprep.subr.bf16.mxu0 %v799_v62  ;;  %578 = vmatprep.subr.bf16.mxu1 %v801_v63 }
  0x78   :  { %538 = vmatpush1.bf16.msra.mxu0 %v798_v1  ;;  %579 = vmatpush1.bf16.msra.mxu1 %v800_v2 }
  0x7b   :  { %556 = vmatmul.mubr.bf16.vlgmr.msra.gmra.mrb[4].mxu0 %v964_v12  ;;  %597 = vmatmul.mubr.bf16.vlgmr.msra.gmra.mrb[4].mxu1 %v964_v12 }
 0x12e   :  { %v475_v15 = vpop.f32.mrb[0].mxu0  ;;  %v516_v18 = vpop.f32.mrb[0].mxu1 }
 0x12f   :  { %v647_v16 = vsub.f32 %v475_v15, %v610_v10  ;;  %v477_v17 = vpop.f32.mrb[1].mxu0  ;;  %v649_v20 = vsub.f32 %v516_v18, %v618_v13  ;;  %v518_v22 = vpop.f32.mrb[1].mxu1  ;;  %v802_v10 = vld [vmem:[%s998_s3] ss:$0 sm:$0xff]  ;;  %s878_s3 = scalar_lea.hbm %s999_s4, 16 }
 0x130   :  { %v648_v19 = vsub.f32 %v477_v17, %v614_v11  ;;  %v479_v21 = vpop.f32.mrb[2].mxu0  ;;  %v650_v24 = vsub.f32 %v518_v22, %v622_v14  ;;  %v520_v25 = vpop.f32.mrb[2].mxu1  ;;  %p879_p10 = scmp.ne.s32.totalorder %s999_s4, %s878_s3  ;;  %p882_p11 = scmp.lt.u32.totalorder %s878_s3, %s999_s4 }
 0x131   :  { %v655_v12 = vmul.f32 %v647_v16, %v647_v16  ;;  %v480_v23 = vpop.f32.mrb[3].mxu0  ;;  %v664_v26 = vmul.f32 %v649_v20, %v649_v20  ;;  %v521_v27 = vpop.f32.mrb[3].mxu1 }
 0x132   :  { %v660_v28 = vmul.f32 %v648_v19, %v648_v19  ;;  %v668_v29 = vmul.f32 %v650_v24, %v650_v24  ;;  %p884_p12 = pnand %p882_p11, %p879_p10 }
 0x133   :  { %v657_v30 = vsel %vm656_vm0, %v655_v12, 0.0  ;;  %v665_v31 = vsel %vm656_vm0, %v664_v26, 0.0 }
 0x134   :  { %658 = vadd.xlane.f32.xlu0 %v657_v30  ;;  %666 = vadd.xlane.f32.xlu1 %v665_v31  ;;  %v669_v32 = vsel %vm656_vm0, %v668_v29, 0.0  ;;  %v661_v33 = vsel %vm656_vm0, %v660_v28, 0.0 }
 0x138   :  { %662 = vadd.xlane.f32.xlu0 %v661_v33  ;;  %670 = vadd.xlane.f32.xlu1 %v669_v32 }
 0x14e   :  { %v557_v41 = vpop.f32.mrb[4].mxu0  ;;  %v598_v44 = vpop.f32.mrb[4].mxu1 }
 0x14f   :  { %v651_v42 = vsub.f32 %v557_v41, %v626_v38  ;;  %v559_v43 = vpop.f32.mrb[5].mxu0  ;;  %v653_v46 = vsub.f32 %v598_v44, %v634_v0  ;;  %v600_v48 = vpop.f32.mrb[5].mxu1 }
 0x150   :  { %v652_v45 = vsub.f32 %v559_v43, %v630_v39  ;;  %v561_v47 = vpop.f32.mrb[6].mxu0  ;;  %v654_v50 = vsub.f32 %v600_v48, %v638_v40  ;;  %v602_v52 = vpop.f32.mrb[6].mxu1 }
 0x151   :  { %v672_v49 = vmul.f32 %v651_v42, %v651_v42  ;;  %v562_v51 = vpop.f32.mrb[7].mxu0  ;;  %v680_v54 = vmul.f32 %v653_v46, %v653_v46  ;;  %v603_v55 = vpop.f32.mrb[7].mxu1 }
 0x152   :  { %v676_v53 = vmul.f32 %v652_v45, %v652_v45  ;;  %v684_v56 = vmul.f32 %v654_v50, %v654_v50 }
 0x153   :  { %v673_v57 = vsel %vm656_vm0, %v672_v49, 0.0  ;;  %v681_v59 = vsel %vm656_vm0, %v680_v54, 0.0 }
 0x154   :  { %674 = vadd.xlane.f32.xlu0 %v673_v57  ;;  %v677_v58 = vsel %vm656_vm0, %v676_v53, 0.0  ;;  %v685_v60 = vsel %vm656_vm0, %v684_v56, 0.0 }
 0x155   :  { %678 = vadd.xlane.f32.xlu1 %v677_v58 }
 0x158   :  { %682 = vadd.xlane.f32.xlu0 %v681_v59 }
 0x159   :  { %686 = vadd.xlane.f32.xlu1 %v685_v60 }
 0x1c1   :  { %v659_v61 = vpop.xlane.xlu0 %658  ;;  %v667_v62 = vpop.xlane.xlu1 %666 }
 0x1c5   :  { %v663_v63 = vpop.xlane.xlu0 %662  ;;  %v671_v2 = vpop.xlane.xlu1 %670 }
 0x1c6   :  { %v689_v1 = vsel %vm688_vm1, %v659_v61, %v663_v63 }
 0x1c7   :  { %v691_v3 = vsel %vm690_vm2, %v689_v1, %v667_v62 }
 0x1c8   :  { %v693_v4 = vsel %vm692_vm3, %v691_v3, %v671_v2 }
 0x1e1   :  { %v675_v5 = vpop.xlane.xlu0 %674 }
 0x1e2   :  { %v695_v6 = vsel %vm694_vm4, %v693_v4, %v675_v5  ;;  %v679_v7 = vpop.xlane.xlu1 %678 }
 0x1e3   :  { %v697_v8 = vsel %vm696_vm5, %v695_v6, %v679_v7 }
 0x1e5   :  { %v683_v9 = vpop.xlane.xlu0 %682 }
 0x1e6   :  { %v699_v11 = vsel %vm698_vm6, %v697_v8, %v683_v9  ;;  %v687_v13 = vpop.xlane.xlu1 %686 }
 0x1e7   :  { %v701_v14 = vsel %vm700_vm7, %v699_v11, %v687_v13 }
 0x1e8   :  { %v709_v15 = vsub.f32 %v701_v14, %v802_v10 }
 0x1ea   :  { %v711_v16 = vsel %vm710_vm8, %v709_v15, inf }
 0x1eb   :  { %712 = vmin.xlane.f32.xlu0 %v711_v16 }
 0x278   :  { %v713_v17 = vpop.xlane.xlu0 %712 }
 0x279   :  { %v714_v18 = vrot.slane %v713_v17, 4 }
 0x27b   :  { %v715_v19 = vmin.f32 %v713_v17, %v714_v18 }
 0x27d   :  { %v716_v20 = vrot.slane %v715_v19, 2 }
 0x27f   :  { %v717_v21 = vmin.f32 %v715_v19, %v716_v20 }
 0x281   :  { %v718_v22 = vrot.slane %v717_v21, 1 }
 0x283   :  { %v719_v12 = vmin.f32 %v717_v21, %v718_v22 }
 0x285   :  { %803 = vpush %v719_v12 }
 0x2b6   :  { %s804_s27 = spop %803 }
 0x2b7   :  { %722 = sst [smem:[#allocation8]] %s804_s27 }
 0x2b8   :  { %887 = shalt.err (!%p884_p12)
}
 0x2b9   :  { %s900_s8 = smov [#allocation8]  }
 0x2ba   :  { %730 = dma.smem_to_hbm %s900_s8, 16, %s999_s4, [#allocation4]  }
 0x2bb   :  { %892 = dma.done.wait [#allocation4], 16  }
 0x2bc   :  { %893 = vsyncadd [#allocation4], 4294967280 }
 0x2bd   :  { %734 = sfence }
 0x2be   :  { %735 = vsyncpa [#allocation3], 1 }
 0x2bf   :  { %736 = vsyncpa [#allocation6], 1 }
 0x2c0   :  { %737 = vsyncpa [#allocation4], 1 }

</bundles_post_ra>
